<compile_context>
chip_gen: v6e
topology: v6e:2x2x1
jax: 0.10.0
libtpu: 0.0.40
codegen_flags: <defaults>
</compile_context>

<pallas_src>
import jax
import jax.numpy as jnp
from jax.experimental import pallas as pl
from jax.experimental.pallas import tpu as pltpu


def cnn_lstm_kernel(xc_ref, wk_ref, bconv_ref, wih_ref, whh_ref,
                    bias_ref, wfc_ref, bfc_ref, out_ref, gx_ref):
    # xc_ref   : (2*Tp*BP, K) im2col windows; rows [0, Tp*BP) are EVEN conv-output
    #            times, rows [Tp*BP, 2*Tp*BP) are ODD conv-output times, each half
    #            ordered (pooled-time major, batch minor): row = p*BP + b.
    # wk_ref   : (K, C)    conv1d weight (kernel-tap major, out-channels on lanes)
    # bconv_ref: (1, C)    conv1d bias
    # wih_ref  : (C, 4H)   LSTM input->gates weight, gate order (f, i, o, g)
    # whh_ref  : (H, 4H)   LSTM hidden->gates weight, gate order (f, i, o, g)
    # bias_ref : (1, 4H)   b_ih + b_hh, gate order (f, i, o, g)
    # wfc_ref  : (H, OP)   final linear weight, padded to OP=128 lanes (col 0 real)
    # bfc_ref  : (1, OP)   final linear bias, padded
    # out_ref  : (BP, OP)  lane-dense output slab
    # gx_ref   : (Tp*BP, 4H) scratch: hoisted input->gate projections
    H4 = whh_ref.shape[1]
    H = H4 // 4
    BP = out_ref.shape[0]
    TB = gx_ref.shape[0]          # Tp * BP
    Tp = TB // BP

    # ---- Fused Conv1d(1->C, k=K) + ReLU: ONE im2col matmul over both conv-time
    #      parities; MaxPool1d(2) = max of top (even) and bottom (odd) halves,
    #      split at the sublane-tile-aligned row TB. ----
    conv = jnp.maximum(
        jnp.dot(xc_ref[...], wk_ref[...], preferred_element_type=jnp.float32)
        + bconv_ref[...], 0.0)                                  # (2*TB, C)
    pooled = jnp.maximum(conv[:TB, :], conv[TB:, :])            # (TB, C)

    # ---- Hoisted input->gate projection: ONE (Tp*BP, C) x (C, 4H) matmul + bias,
    #      fully outside the serial recurrence ----
    gx_ref[...] = (jnp.dot(pooled, wih_ref[...], preferred_element_type=jnp.float32)
                   + bias_ref[...])

    # ---- LSTM recurrence: h/c carried as vreg values; only h @ W_hh stays on
    #      the per-step dependency chain.  whh is a loop-invariant value so the
    #      MXU weight push is hoisted out of the unrolled loop by Mosaic. ----
    whh = whh_ref[...]

    def step(t, carry):
        h, c = carry
        row = pl.multiple_of(t * BP, BP)
        gates = gx_ref[pl.ds(row, BP), :] + jnp.dot(
            h, whh, preferred_element_type=jnp.float32)         # (BP, 4H)
        # Gate order (f, i, o, g): one sigmoid over a contiguous 3H-lane block,
        # and f/c, i/g, o/tanh(c_new) are lane-aligned multiply partners.
        sig = jax.nn.sigmoid(gates[:, :3 * H])
        f = sig[:, 0:H]
        i = sig[:, H:2 * H]
        o = sig[:, 2 * H:3 * H]
        g = jnp.tanh(gates[:, 3 * H:])
        c_new = f * c + i * g
        h_new = o * jnp.tanh(c_new)
        return h_new, c_new

    zeros = jnp.zeros((BP, H), jnp.float32)
    h_last, _ = jax.lax.fori_loop(0, Tp, step, (zeros, zeros), unroll=True)

    # ---- Final Linear on the last hidden state, lane-dense padded store ----
    out_ref[...] = (jnp.dot(h_last, wfc_ref[...], preferred_element_type=jnp.float32)
                    + bfc_ref[...])


def preprocess_params(params):
    """ONE-TIME parameter layout glue (hoisted out of the per-call path):
    gate reorder (i,f,g,o)->(f,i,o,g), weight transposes to (in, out) layout,
    bias combine, and FC lane padding to a 128-lane slab."""
    H = params["w_hh"].shape[1]   # 64
    OP = 128                      # lane-dense padded output width (fc_out <= 128)

    def reorder_gates(w):  # PyTorch rows (i, f, g, o) -> (f, i, o, g)
        return jnp.concatenate(
            [w[H:2 * H], w[0:H], w[3 * H:4 * H], w[2 * H:3 * H]], axis=0)

    return dict(
        wk=jnp.transpose(params["conv_w"][:, 0, :], (1, 0)),              # (K, C)
        bconv=params["conv_b"][None, :],                                  # (1, C)
        wih=jnp.transpose(reorder_gates(params["w_ih"]), (1, 0)),         # (C, 4H)
        whh=jnp.transpose(reorder_gates(params["w_hh"]), (1, 0)),         # (H, 4H)
        bias=jnp.transpose(
            reorder_gates((params["b_ih"] + params["b_hh"])[:, None]),
            (1, 0)),                                                      # (1, 4H)
        wfc=jnp.zeros((H, OP), jnp.float32).at[:, 0].set(params["fc_w"][0]),
        bfc=jnp.zeros((1, OP), jnp.float32).at[0, 0].set(params["fc_b"][0]),
    )


def cnn_lstm_forward(x, prep):
    """x: (B, L, 1) float32.  prep: output of preprocess_params.  Returns (B, 1)."""
    B, L, _ = x.shape
    K, C = prep["wk"].shape                   # (3, 16)
    H = prep["whh"].shape[0]                  # 64
    OP = prep["wfc"].shape[1]                 # 128
    Lout = L - K + 1
    Tp = Lout // 2                            # MaxPool1d(2) floor behavior
    BP = ((B + 7) // 8) * 8                   # pad batch to full sublane tiles
    TB = Tp * BP

    # ---- x-dependent layout glue only: batch pad + im2col, even conv times
    #      stacked above odd conv times so the kernel fuses Conv+ReLU into one
    #      matmul and MaxPool into one elementwise max ----
    x1 = jnp.pad(x[:, :, 0], ((0, BP - B), (0, 0)))                   # (BP, L)
    win = jnp.stack([x1[:, k:k + Lout] for k in range(K)], axis=-1)   # (BP, Lout, K)
    xce = jnp.transpose(win[:, 0:2 * Tp:2], (1, 0, 2)).reshape(TB, K)
    xco = jnp.transpose(win[:, 1:2 * Tp:2], (1, 0, 2)).reshape(TB, K)
    xc = jnp.concatenate([xce, xco], axis=0)                          # (2*TB, K)

    out_pad = pl.pallas_call(
        cnn_lstm_kernel,
        out_shape=jax.ShapeDtypeStruct((BP, OP), jnp.float32),
        in_specs=[pl.BlockSpec(memory_space=pltpu.MemorySpace.VMEM)] * 8,
        out_specs=pl.BlockSpec(memory_space=pltpu.MemorySpace.VMEM),
        scratch_shapes=[
            pltpu.VMEM((TB, 4 * H), jnp.float32),   # hoisted input->gate projections
        ],
    )(xc, prep["wk"], prep["bconv"], prep["wih"], prep["whh"],
      prep["bias"], prep["wfc"], prep["bfc"])
    return out_pad[:B, :1]


def reference_forward(x, params):
    """Pure-JAX replica of the PyTorch forward, for verification."""
    B, L, _ = x.shape
    C, _, K = params["conv_w"].shape
    H = params["w_hh"].shape[1]
    Lout = L - K + 1
    Tp = Lout // 2
    xs = jnp.stack([x[:, k:k + Lout, 0] for k in range(K)], axis=-1)        # (B, Lout, K)
    conv = jnp.einsum("blk,ck->blc", xs, params["conv_w"][:, 0, :]) + params["conv_b"]
    conv = jnp.maximum(conv, 0.0)
    pooled = conv[:, :Tp * 2].reshape(B, Tp, 2, C).max(axis=2)              # (B, Tp, C)
    h = jnp.zeros((B, H), jnp.float32)
    c = jnp.zeros((B, H), jnp.float32)
    for t in range(Tp):
        g = (pooled[:, t] @ params["w_ih"].T + params["b_ih"]
             + h @ params["w_hh"].T + params["b_hh"])
        i = jax.nn.sigmoid(g[:, :H])
        f = jax.nn.sigmoid(g[:, H:2 * H])
        gg = jnp.tanh(g[:, 2 * H:3 * H])
        o = jax.nn.sigmoid(g[:, 3 * H:])
        c = f * c + i * gg
        h = o * jnp.tanh(c)
    return h @ params["fc_w"].T + params["fc_b"]


if __name__ == "__main__":
    key = jax.random.PRNGKey(0)
    ks = jax.random.split(key, 9)

    def u(k, shape, scale=0.2):
        return jax.random.uniform(k, shape, jnp.float32, -scale, scale)

    # Deterministic synthetic parameters, shapes match the PyTorch module.
    params = dict(
        conv_w=u(ks[0], (16, 1, 3)),    # nn.Conv1d(1, 16, kernel_size=3)
        conv_b=u(ks[1], (16,)),
        w_ih=u(ks[2], (4 * 64, 16)),    # nn.LSTM(16, 64, batch_first=True)
        w_hh=u(ks[3], (4 * 64, 64)),
        b_ih=u(ks[4], (4 * 64,)),
        b_hh=u(ks[5], (4 * 64,)),
        fc_w=u(ks[6], (1, 64)),         # nn.Linear(64, 1)
        fc_b=u(ks[7], (1,)),
    )

    # Small input: batch=2, seq_len=18, 1 feature -> conv len 16 -> pooled seq 8.
    x = jax.random.normal(ks[8], (2, 18, 1), jnp.float32)

    prep = preprocess_params(params)          # one-time parameter layout glue
    out = cnn_lstm_forward(x, prep)
    out = jax.block_until_ready(out)

    ref = reference_forward(x, params)
    assert out.shape == (2, 1)
    assert jnp.allclose(out, ref, rtol=5e-3, atol=5e-4)

    print("KERNEL_OK")
</pallas_src>

<mosaic_0001>
module attributes {stable_mosaic.version = 11 : i64} {
  func.func @cnn_lstm_kernel(%arg0: memref<128x3xf32, #tpu.memory_space<vmem>>, %arg1: memref<3x16xf32, #tpu.memory_space<vmem>>, %arg2: memref<1x16xf32, #tpu.memory_space<vmem>>, %arg3: memref<16x256xf32, #tpu.memory_space<vmem>>, %arg4: memref<64x256xf32, #tpu.memory_space<vmem>>, %arg5: memref<1x256xf32, #tpu.memory_space<vmem>>, %arg6: memref<64x128xf32, #tpu.memory_space<vmem>>, %arg7: memref<1x128xf32, #tpu.memory_space<vmem>>, %arg8: memref<8x128xf32, #tpu.memory_space<vmem>>, %arg9: memref<64x256xf32, #tpu.memory_space<vmem>>) attributes {dimension_semantics = [], scalar_prefetch = 0 : i64, scratch_operands = 1 : i64, tpu.core_type = #tpu.core_type<tc>} {
    %c0 = arith.constant 0 : index
    %c0_0 = arith.constant 0 : index
    %0 = vector.load %arg0[%c0, %c0_0] : memref<128x3xf32, #tpu.memory_space<vmem>>, vector<128x3xf32>
    %c0_1 = arith.constant 0 : index
    %c0_2 = arith.constant 0 : index
    %1 = vector.load %arg1[%c0_1, %c0_2] : memref<3x16xf32, #tpu.memory_space<vmem>>, vector<3x16xf32>
    %cst = arith.constant dense<0.000000e+00> : vector<128x16xf32>
    %2 = tpu.matmul %0, %1, %cst {dimension_numbers = #tpu.dot_dimension_numbers<[1], [0], [0], [1], [0, 0, 1, 1], [], []>} : vector<128x3xf32>, vector<3x16xf32>, vector<128x16xf32> -> vector<128x16xf32>
    %c0_3 = arith.constant 0 : index
    %c0_4 = arith.constant 0 : index
    %3 = vector.load %arg2[%c0_3, %c0_4] : memref<1x16xf32, #tpu.memory_space<vmem>>, vector<1x16xf32>
    %4 = vector.broadcast %3 : vector<1x16xf32> to vector<128x16xf32>
    %5 = arith.addf %2, %4 : vector<128x16xf32>
    %cst_5 = arith.constant 0.000000e+00 : f32
    %6 = vector.broadcast %cst_5 : f32 to vector<128x16xf32>
    %7 = arith.maximumf %5, %6 : vector<128x16xf32>
    %8 = vector.extract_strided_slice %7 {offsets = [0, 0], sizes = [64, 16], strides = [1, 1]} : vector<128x16xf32> to vector<64x16xf32>
    %9 = vector.extract_strided_slice %7 {offsets = [64, 0], sizes = [64, 16], strides = [1, 1]} : vector<128x16xf32> to vector<64x16xf32>
    %10 = arith.maximumf %8, %9 : vector<64x16xf32>
    %c0_6 = arith.constant 0 : index
    %c0_7 = arith.constant 0 : index
    %11 = vector.load %arg3[%c0_6, %c0_7] : memref<16x256xf32, #tpu.memory_space<vmem>>, vector<16x256xf32>
    %cst_8 = arith.constant dense<0.000000e+00> : vector<64x256xf32>
    %12 = tpu.matmul %10, %11, %cst_8 {dimension_numbers = #tpu.dot_dimension_numbers<[1], [0], [0], [1], [0, 0, 1, 1], [], []>} : vector<64x16xf32>, vector<16x256xf32>, vector<64x256xf32> -> vector<64x256xf32>
    %c0_9 = arith.constant 0 : index
    %c0_10 = arith.constant 0 : index
    %13 = vector.load %arg5[%c0_9, %c0_10] : memref<1x256xf32, #tpu.memory_space<vmem>>, vector<1x256xf32>
    %14 = vector.broadcast %13 : vector<1x256xf32> to vector<64x256xf32>
    %15 = arith.addf %12, %14 : vector<64x256xf32>
    %c0_11 = arith.constant 0 : index
    %c0_12 = arith.constant 0 : index
    %16 = vector.load %arg9[%c0_11, %c0_12] : memref<64x256xf32, #tpu.memory_space<vmem>>, vector<64x256xf32>
    tpu.vector_store %arg9[%c0_11, %c0_12], %15 {strides = array<i32>} : memref<64x256xf32, #tpu.memory_space<vmem>>, vector<64x256xf32>,
    %c0_13 = arith.constant 0 : index
    %c0_14 = arith.constant 0 : index
    %17 = vector.load %arg4[%c0_13, %c0_14] : memref<64x256xf32, #tpu.memory_space<vmem>>, vector<64x256xf32>
    %cst_15 = arith.constant 0.000000e+00 : f32
    %18 = vector.broadcast %cst_15 : f32 to vector<8x64xf32>
    %c0_i32 = arith.constant 0 : i32
    %c8_i32 = arith.constant 8 : i32
    %19 = arith.muli %c0_i32, %c8_i32 : i32
    %20 = tpu.assume_multiple %19, 8 : i32
    %21 = arith.index_cast %20 : i32 to index
    %c0_16 = arith.constant 0 : index
    %22 = vector.load %arg9[%21, %c0_16] : memref<64x256xf32, #tpu.memory_space<vmem>>, vector<8x256xf32>
    %cst_17 = arith.constant dense<0.000000e+00> : vector<8x256xf32>
    %23 = tpu.matmul %18, %17, %cst_17 {dimension_numbers = #tpu.dot_dimension_numbers<[1], [0], [0], [1], [0, 0, 1, 1], [], []>} : vector<8x64xf32>, vector<64x256xf32>, vector<8x256xf32> -> vector<8x256xf32>
    %24 = arith.addf %22, %23 : vector<8x256xf32>
    %25 = vector.extract_strided_slice %24 {offsets = [0, 0], sizes = [8, 192], strides = [1, 1]} : vector<8x256xf32> to vector<8x192xf32>
    %26 = arith.negf %25 : vector<8x192xf32>
    %27 = math.exp %26 : vector<8x192xf32>
    %cst_18 = arith.constant 1.000000e+00 : f32
    %28 = vector.broadcast %cst_18 : f32 to vector<8x192xf32>
    %29 = arith.addf %28, %27 : vector<8x192xf32>
    %30 = arith.divf %28, %29 : vector<8x192xf32>
    %31 = vector.extract_strided_slice %30 {offsets = [0, 0], sizes = [8, 64], strides = [1, 1]} : vector<8x192xf32> to vector<8x64xf32>
    %32 = vector.extract_strided_slice %30 {offsets = [0, 64], sizes = [8, 64], strides = [1, 1]} : vector<8x192xf32> to vector<8x64xf32>
    %33 = vector.extract_strided_slice %30 {offsets = [0, 128], sizes = [8, 64], strides = [1, 1]} : vector<8x192xf32> to vector<8x64xf32>
    %34 = vector.extract_strided_slice %24 {offsets = [0, 192], sizes = [8, 64], strides = [1, 1]} : vector<8x256xf32> to vector<8x64xf32>
    %35 = math.tanh %34 : vector<8x64xf32>
    %36 = arith.mulf %31, %18 : vector<8x64xf32>
    %37 = arith.mulf %32, %35 : vector<8x64xf32>
    %38 = arith.addf %36, %37 : vector<8x64xf32>
    %39 = math.tanh %38 : vector<8x64xf32>
    %40 = arith.mulf %33, %39 : vector<8x64xf32>
    %c1_i32 = arith.constant 1 : i32
    %c8_i32_19 = arith.constant 8 : i32
    %41 = arith.muli %c1_i32, %c8_i32_19 : i32
    %42 = tpu.assume_multiple %41, 8 : i32
    %43 = arith.index_cast %42 : i32 to index
    %c0_20 = arith.constant 0 : index
    %44 = vector.load %arg9[%43, %c0_20] : memref<64x256xf32, #tpu.memory_space<vmem>>, vector<8x256xf32>
    %cst_21 = arith.constant dense<0.000000e+00> : vector<8x256xf32>
    %45 = tpu.matmul %40, %17, %cst_21 {dimension_numbers = #tpu.dot_dimension_numbers<[1], [0], [0], [1], [0, 0, 1, 1], [], []>} : vector<8x64xf32>, vector<64x256xf32>, vector<8x256xf32> -> vector<8x256xf32>
    %46 = arith.addf %44, %45 : vector<8x256xf32>
    %47 = vector.extract_strided_slice %46 {offsets = [0, 0], sizes = [8, 192], strides = [1, 1]} : vector<8x256xf32> to vector<8x192xf32>
    %48 = arith.negf %47 : vector<8x192xf32>
    %49 = math.exp %48 : vector<8x192xf32>
    %cst_22 = arith.constant 1.000000e+00 : f32
    %50 = vector.broadcast %cst_22 : f32 to vector<8x192xf32>
    %51 = arith.addf %50, %49 : vector<8x192xf32>
    %52 = arith.divf %50, %51 : vector<8x192xf32>
    %53 = vector.extract_strided_slice %52 {offsets = [0, 0], sizes = [8, 64], strides = [1, 1]} : vector<8x192xf32> to vector<8x64xf32>
    %54 = vector.extract_strided_slice %52 {offsets = [0, 64], sizes = [8, 64], strides = [1, 1]} : vector<8x192xf32> to vector<8x64xf32>
    %55 = vector.extract_strided_slice %52 {offsets = [0, 128], sizes = [8, 64], strides = [1, 1]} : vector<8x192xf32> to vector<8x64xf32>
    %56 = vector.extract_strided_slice %46 {offsets = [0, 192], sizes = [8, 64], strides = [1, 1]} : vector<8x256xf32> to vector<8x64xf32>
    %57 = math.tanh %56 : vector<8x64xf32>
    %58 = arith.mulf %53, %38 : vector<8x64xf32>
    %59 = arith.mulf %54, %57 : vector<8x64xf32>
    %60 = arith.addf %58, %59 : vector<8x64xf32>
    %61 = math.tanh %60 : vector<8x64xf32>
    %62 = arith.mulf %55, %61 : vector<8x64xf32>
    %c2_i32 = arith.constant 2 : i32
    %c8_i32_23 = arith.constant 8 : i32
    %63 = arith.muli %c2_i32, %c8_i32_23 : i32
    %64 = tpu.assume_multiple %63, 8 : i32
    %65 = arith.index_cast %64 : i32 to index
    %c0_24 = arith.constant 0 : index
    %66 = vector.load %arg9[%65, %c0_24] : memref<64x256xf32, #tpu.memory_space<vmem>>, vector<8x256xf32>
    %cst_25 = arith.constant dense<0.000000e+00> : vector<8x256xf32>
    %67 = tpu.matmul %62, %17, %cst_25 {dimension_numbers = #tpu.dot_dimension_numbers<[1], [0], [0], [1], [0, 0, 1, 1], [], []>} : vector<8x64xf32>, vector<64x256xf32>, vector<8x256xf32> -> vector<8x256xf32>
    %68 = arith.addf %66, %67 : vector<8x256xf32>
    %69 = vector.extract_strided_slice %68 {offsets = [0, 0], sizes = [8, 192], strides = [1, 1]} : vector<8x256xf32> to vector<8x192xf32>
    %70 = arith.negf %69 : vector<8x192xf32>
    %71 = math.exp %70 : vector<8x192xf32>
    %cst_26 = arith.constant 1.000000e+00 : f32
    %72 = vector.broadcast %cst_26 : f32 to vector<8x192xf32>
    %73 = arith.addf %72, %71 : vector<8x192xf32>
    %74 = arith.divf %72, %73 : vector<8x192xf32>
    %75 = vector.extract_strided_slice %74 {offsets = [0, 0], sizes = [8, 64], strides = [1, 1]} : vector<8x192xf32> to vector<8x64xf32>
    %76 = vector.extract_strided_slice %74 {offsets = [0, 64], sizes = [8, 64], strides = [1, 1]} : vector<8x192xf32> to vector<8x64xf32>
    %77 = vector.extract_strided_slice %74 {offsets = [0, 128], sizes = [8, 64], strides = [1, 1]} : vector<8x192xf32> to vector<8x64xf32>
    %78 = vector.extract_strided_slice %68 {offsets = [0, 192], sizes = [8, 64], strides = [1, 1]} : vector<8x256xf32> to vector<8x64xf32>
    %79 = math.tanh %78 : vector<8x64xf32>
    %80 = arith.mulf %75, %60 : vector<8x64xf32>
    %81 = arith.mulf %76, %79 : vector<8x64xf32>
    %82 = arith.addf %80, %81 : vector<8x64xf32>
    %83 = math.tanh %82 : vector<8x64xf32>
    %84 = arith.mulf %77, %83 : vector<8x64xf32>
    %c3_i32 = arith.constant 3 : i32
    %c8_i32_27 = arith.constant 8 : i32
    %85 = arith.muli %c3_i32, %c8_i32_27 : i32
    %86 = tpu.assume_multiple %85, 8 : i32
    %87 = arith.index_cast %86 : i32 to index
    %c0_28 = arith.constant 0 : index
    %88 = vector.load %arg9[%87, %c0_28] : memref<64x256xf32, #tpu.memory_space<vmem>>, vector<8x256xf32>
    %cst_29 = arith.constant dense<0.000000e+00> : vector<8x256xf32>
    %89 = tpu.matmul %84, %17, %cst_29 {dimension_numbers = #tpu.dot_dimension_numbers<[1], [0], [0], [1], [0, 0, 1, 1], [], []>} : vector<8x64xf32>, vector<64x256xf32>, vector<8x256xf32> -> vector<8x256xf32>
    %90 = arith.addf %88, %89 : vector<8x256xf32>
    %91 = vector.extract_strided_slice %90 {offsets = [0, 0], sizes = [8, 192], strides = [1, 1]} : vector<8x256xf32> to vector<8x192xf32>
    %92 = arith.negf %91 : vector<8x192xf32>
    %93 = math.exp %92 : vector<8x192xf32>
    %cst_30 = arith.constant 1.000000e+00 : f32
    %94 = vector.broadcast %cst_30 : f32 to vector<8x192xf32>
    %95 = arith.addf %94, %93 : vector<8x192xf32>
    %96 = arith.divf %94, %95 : vector<8x192xf32>
    %97 = vector.extract_strided_slice %96 {offsets = [0, 0], sizes = [8, 64], strides = [1, 1]} : vector<8x192xf32> to vector<8x64xf32>
    %98 = vector.extract_strided_slice %96 {offsets = [0, 64], sizes = [8, 64], strides = [1, 1]} : vector<8x192xf32> to vector<8x64xf32>
    %99 = vector.extract_strided_slice %96 {offsets = [0, 128], sizes = [8, 64], strides = [1, 1]} : vector<8x192xf32> to vector<8x64xf32>
    %100 = vector.extract_strided_slice %90 {offsets = [0, 192], sizes = [8, 64], strides = [1, 1]} : vector<8x256xf32> to vector<8x64xf32>
    %101 = math.tanh %100 : vector<8x64xf32>
    %102 = arith.mulf %97, %82 : vector<8x64xf32>
    %103 = arith.mulf %98, %101 : vector<8x64xf32>
    %104 = arith.addf %102, %103 : vector<8x64xf32>
    %105 = math.tanh %104 : vector<8x64xf32>
    %106 = arith.mulf %99, %105 : vector<8x64xf32>
    %c4_i32 = arith.constant 4 : i32
    %c8_i32_31 = arith.constant 8 : i32
    %107 = arith.muli %c4_i32, %c8_i32_31 : i32
    %108 = tpu.assume_multiple %107, 8 : i32
    %109 = arith.index_cast %108 : i32 to index
    %c0_32 = arith.constant 0 : index
    %110 = vector.load %arg9[%109, %c0_32] : memref<64x256xf32, #tpu.memory_space<vmem>>, vector<8x256xf32>
    %cst_33 = arith.constant dense<0.000000e+00> : vector<8x256xf32>
    %111 = tpu.matmul %106, %17, %cst_33 {dimension_numbers = #tpu.dot_dimension_numbers<[1], [0], [0], [1], [0, 0, 1, 1], [], []>} : vector<8x64xf32>, vector<64x256xf32>, vector<8x256xf32> -> vector<8x256xf32>
    %112 = arith.addf %110, %111 : vector<8x256xf32>
    %113 = vector.extract_strided_slice %112 {offsets = [0, 0], sizes = [8, 192], strides = [1, 1]} : vector<8x256xf32> to vector<8x192xf32>
    %114 = arith.negf %113 : vector<8x192xf32>
    %115 = math.exp %114 : vector<8x192xf32>
    %cst_34 = arith.constant 1.000000e+00 : f32
    %116 = vector.broadcast %cst_34 : f32 to vector<8x192xf32>
    %117 = arith.addf %116, %115 : vector<8x192xf32>
    %118 = arith.divf %116, %117 : vector<8x192xf32>
    %119 = vector.extract_strided_slice %118 {offsets = [0, 0], sizes = [8, 64], strides = [1, 1]} : vector<8x192xf32> to vector<8x64xf32>
    %120 = vector.extract_strided_slice %118 {offsets = [0, 64], sizes = [8, 64], strides = [1, 1]} : vector<8x192xf32> to vector<8x64xf32>
    %121 = vector.extract_strided_slice %118 {offsets = [0, 128], sizes = [8, 64], strides = [1, 1]} : vector<8x192xf32> to vector<8x64xf32>
    %122 = vector.extract_strided_slice %112 {offsets = [0, 192], sizes = [8, 64], strides = [1, 1]} : vector<8x256xf32> to vector<8x64xf32>
    %123 = math.tanh %122 : vector<8x64xf32>
    %124 = arith.mulf %119, %104 : vector<8x64xf32>
    %125 = arith.mulf %120, %123 : vector<8x64xf32>
    %126 = arith.addf %124, %125 : vector<8x64xf32>
    %127 = math.tanh %126 : vector<8x64xf32>
    %128 = arith.mulf %121, %127 : vector<8x64xf32>
    %c5_i32 = arith.constant 5 : i32
    %c8_i32_35 = arith.constant 8 : i32
    %129 = arith.muli %c5_i32, %c8_i32_35 : i32
    %130 = tpu.assume_multiple %129, 8 : i32
    %131 = arith.index_cast %130 : i32 to index
    %c0_36 = arith.constant 0 : index
    %132 = vector.load %arg9[%131, %c0_36] : memref<64x256xf32, #tpu.memory_space<vmem>>, vector<8x256xf32>
    %cst_37 = arith.constant dense<0.000000e+00> : vector<8x256xf32>
    %133 = tpu.matmul %128, %17, %cst_37 {dimension_numbers = #tpu.dot_dimension_numbers<[1], [0], [0], [1], [0, 0, 1, 1], [], []>} : vector<8x64xf32>, vector<64x256xf32>, vector<8x256xf32> -> vector<8x256xf32>
    %134 = arith.addf %132, %133 : vector<8x256xf32>
    %135 = vector.extract_strided_slice %134 {offsets = [0, 0], sizes = [8, 192], strides = [1, 1]} : vector<8x256xf32> to vector<8x192xf32>
    %136 = arith.negf %135 : vector<8x192xf32>
    %137 = math.exp %136 : vector<8x192xf32>
    %cst_38 = arith.constant 1.000000e+00 : f32
    %138 = vector.broadcast %cst_38 : f32 to vector<8x192xf32>
    %139 = arith.addf %138, %137 : vector<8x192xf32>
    %140 = arith.divf %138, %139 : vector<8x192xf32>
    %141 = vector.extract_strided_slice %140 {offsets = [0, 0], sizes = [8, 64], strides = [1, 1]} : vector<8x192xf32> to vector<8x64xf32>
    %142 = vector.extract_strided_slice %140 {offsets = [0, 64], sizes = [8, 64], strides = [1, 1]} : vector<8x192xf32> to vector<8x64xf32>
    %143 = vector.extract_strided_slice %140 {offsets = [0, 128], sizes = [8, 64], strides = [1, 1]} : vector<8x192xf32> to vector<8x64xf32>
    %144 = vector.extract_strided_slice %134 {offsets = [0, 192], sizes = [8, 64], strides = [1, 1]} : vector<8x256xf32> to vector<8x64xf32>
    %145 = math.tanh %144 : vector<8x64xf32>
    %146 = arith.mulf %141, %126 : vector<8x64xf32>
    %147 = arith.mulf %142, %145 : vector<8x64xf32>
    %148 = arith.addf %146, %147 : vector<8x64xf32>
    %149 = math.tanh %148 : vector<8x64xf32>
    %150 = arith.mulf %143, %149 : vector<8x64xf32>
    %c6_i32 = arith.constant 6 : i32
    %c8_i32_39 = arith.constant 8 : i32
    %151 = arith.muli %c6_i32, %c8_i32_39 : i32
    %152 = tpu.assume_multiple %151, 8 : i32
    %153 = arith.index_cast %152 : i32 to index
    %c0_40 = arith.constant 0 : index
    %154 = vector.load %arg9[%153, %c0_40] : memref<64x256xf32, #tpu.memory_space<vmem>>, vector<8x256xf32>
    %cst_41 = arith.constant dense<0.000000e+00> : vector<8x256xf32>
    %155 = tpu.matmul %150, %17, %cst_41 {dimension_numbers = #tpu.dot_dimension_numbers<[1], [0], [0], [1], [0, 0, 1, 1], [], []>} : vector<8x64xf32>, vector<64x256xf32>, vector<8x256xf32> -> vector<8x256xf32>
    %156 = arith.addf %154, %155 : vector<8x256xf32>
    %157 = vector.extract_strided_slice %156 {offsets = [0, 0], sizes = [8, 192], strides = [1, 1]} : vector<8x256xf32> to vector<8x192xf32>
    %158 = arith.negf %157 : vector<8x192xf32>
    %159 = math.exp %158 : vector<8x192xf32>
    %cst_42 = arith.constant 1.000000e+00 : f32
    %160 = vector.broadcast %cst_42 : f32 to vector<8x192xf32>
    %161 = arith.addf %160, %159 : vector<8x192xf32>
    %162 = arith.divf %160, %161 : vector<8x192xf32>
    %163 = vector.extract_strided_slice %162 {offsets = [0, 0], sizes = [8, 64], strides = [1, 1]} : vector<8x192xf32> to vector<8x64xf32>
    %164 = vector.extract_strided_slice %162 {offsets = [0, 64], sizes = [8, 64], strides = [1, 1]} : vector<8x192xf32> to vector<8x64xf32>
    %165 = vector.extract_strided_slice %162 {offsets = [0, 128], sizes = [8, 64], strides = [1, 1]} : vector<8x192xf32> to vector<8x64xf32>
    %166 = vector.extract_strided_slice %156 {offsets = [0, 192], sizes = [8, 64], strides = [1, 1]} : vector<8x256xf32> to vector<8x64xf32>
    %167 = math.tanh %166 : vector<8x64xf32>
    %168 = arith.mulf %163, %148 : vector<8x64xf32>
    %169 = arith.mulf %164, %167 : vector<8x64xf32>
    %170 = arith.addf %168, %169 : vector<8x64xf32>
    %171 = math.tanh %170 : vector<8x64xf32>
    %172 = arith.mulf %165, %171 : vector<8x64xf32>
    %c7_i32 = arith.constant 7 : i32
    %c8_i32_43 = arith.constant 8 : i32
    %173 = arith.muli %c7_i32, %c8_i32_43 : i32
    %174 = tpu.assume_multiple %173, 8 : i32
    %175 = arith.index_cast %174 : i32 to index
    %c0_44 = arith.constant 0 : index
    %176 = vector.load %arg9[%175, %c0_44] : memref<64x256xf32, #tpu.memory_space<vmem>>, vector<8x256xf32>
    %cst_45 = arith.constant dense<0.000000e+00> : vector<8x256xf32>
    %177 = tpu.matmul %172, %17, %cst_45 {dimension_numbers = #tpu.dot_dimension_numbers<[1], [0], [0], [1], [0, 0, 1, 1], [], []>} : vector<8x64xf32>, vector<64x256xf32>, vector<8x256xf32> -> vector<8x256xf32>
    %178 = arith.addf %176, %177 : vector<8x256xf32>
    %179 = vector.extract_strided_slice %178 {offsets = [0, 0], sizes = [8, 192], strides = [1, 1]} : vector<8x256xf32> to vector<8x192xf32>
    %180 = arith.negf %179 : vector<8x192xf32>
    %181 = math.exp %180 : vector<8x192xf32>
    %cst_46 = arith.constant 1.000000e+00 : f32
    %182 = vector.broadcast %cst_46 : f32 to vector<8x192xf32>
    %183 = arith.addf %182, %181 : vector<8x192xf32>
    %184 = arith.divf %182, %183 : vector<8x192xf32>
    %185 = vector.extract_strided_slice %184 {offsets = [0, 0], sizes = [8, 64], strides = [1, 1]} : vector<8x192xf32> to vector<8x64xf32>
    %186 = vector.extract_strided_slice %184 {offsets = [0, 64], sizes = [8, 64], strides = [1, 1]} : vector<8x192xf32> to vector<8x64xf32>
    %187 = vector.extract_strided_slice %184 {offsets = [0, 128], sizes = [8, 64], strides = [1, 1]} : vector<8x192xf32> to vector<8x64xf32>
    %188 = vector.extract_strided_slice %178 {offsets = [0, 192], sizes = [8, 64], strides = [1, 1]} : vector<8x256xf32> to vector<8x64xf32>
    %189 = math.tanh %188 : vector<8x64xf32>
    %190 = arith.mulf %185, %170 : vector<8x64xf32>
    %191 = arith.mulf %186, %189 : vector<8x64xf32>
    %192 = arith.addf %190, %191 : vector<8x64xf32>
    %193 = math.tanh %192 : vector<8x64xf32>
    %194 = arith.mulf %187, %193 : vector<8x64xf32>
    %c8_i32_47 = arith.constant 8 : i32
    %c0_48 = arith.constant 0 : index
    %c0_49 = arith.constant 0 : index
    %195 = vector.load %arg6[%c0_48, %c0_49] : memref<64x128xf32, #tpu.memory_space<vmem>>, vector<64x128xf32>
    %cst_50 = arith.constant dense<0.000000e+00> : vector<8x128xf32>
    %196 = tpu.matmul %194, %195, %cst_50 {dimension_numbers = #tpu.dot_dimension_numbers<[1], [0], [0], [1], [0, 0, 1, 1], [], []>} : vector<8x64xf32>, vector<64x128xf32>, vector<8x128xf32> -> vector<8x128xf32>
    %c0_51 = arith.constant 0 : index
    %c0_52 = arith.constant 0 : index
    %197 = vector.load %arg7[%c0_51, %c0_52] : memref<1x128xf32, #tpu.memory_space<vmem>>, vector<1x128xf32>
    %198 = vector.broadcast %197 : vector<1x128xf32> to vector<8x128xf32>
    %199 = arith.addf %196, %198 : vector<8x128xf32>
    %c0_53 = arith.constant 0 : index
    %c0_54 = arith.constant 0 : index
    %200 = vector.load %arg8[%c0_53, %c0_54] : memref<8x128xf32, #tpu.memory_space<vmem>>, vector<8x128xf32>
    tpu.vector_store %arg8[%c0_53, %c0_54], %199 {strides = array<i32>} : memref<8x128xf32, #tpu.memory_space<vmem>>, vector<8x128xf32>,
    return
  }
}

</mosaic_0001>

<bundles_post_ra>
// kernel: tpu_custom_call.1
= control target key start
LH: loop header
LB: loop body
LE: loop exit
PB: predicated region body
PF: predicated region fallthrough
CT: control target
= control target key end

     0   :  { %13 = vsyncpa [#allocation4], 0  ;;  %s2204_s0 = inlined_call_operand.vmem [shape: f32[128,3], index: 0, kind: input, shape index: {}]   ;;  %s2205_s1 = inlined_call_operand.vmem [shape: f32[3,16], index: 1, kind: input, shape index: {}]   ;;  %s2206_s2 = inlined_call_operand.vmem [shape: f32[1,16], index: 2, kind: input, shape index: {}]   ;;  %s2207_s3 = inlined_call_operand.hbm [shape: f32[16,256], index: 3, kind: input, shape index: {}]   ;;  %s2208_s4 = inlined_call_operand.vmem [shape: f32[64,256], index: 4, kind: input, shape index: {}]   ;;  %s2209_s5 = inlined_call_operand.vmem [shape: f32[1,256], index: 5, kind: input, shape index: {}]   ;;  %s2210_s6 = inlined_call_operand.hbm [shape: f32[64,128], index: 6, kind: input, shape index: {}]   ;;  %s2211_s7 = inlined_call_operand.vmem [shape: f32[1,128], index: 7, kind: input, shape index: {}]   ;;  %s2212_s8 = inlined_call_operand.hbm [shape: f32[8,128], index: 8, kind: output, shape index: {}]  }
   0x1   :  { %14 = vsyncpa [#allocation7], 0 }
   0x2   :  { %15 = vsyncpa [#allocation5], 0  ;;  %s1723_s27 = smov [#allocation3]  }
   0x3   :  { %s27_s28 = sshll.u32 %s1723_s27, 4  ;;  %s28_s28 = int_to_ptr.vmem [resolvable:$true] %s27_s28 }
   0x4   :  { %s1665_s29 = scalar_lea.vmem %s28_s28, 512  ;;  %p1670_p1 = scmp.lt.s32.totalorder %s28_s28, %s28_s28 }
   0x5   :  { %p1666_p0 = scmp.ne.s32.totalorder %s28_s28, %s1665_s29  ;;  %p1671_p2 = scmp.lt.s32.totalorder %s1665_s29, %s1665_s29 }
   0x7   :  { %p1672_p3 = por %p1671_p2, %p1670_p1 }
   0x9   :  { %p1673_p4 = pnand %p1672_p3, %p1666_p0 }
   0xb   :  { %1676 = shalt.err (!%p1673_p4)
}
   0xc   :  { %s1724_s30 = smov 256   ;;  %s1725_s9 = smov 16  }
   0xd   :  { %33 = dma.hbm_to_vmem [thread:$0]  %s2207_s3, 512, %s28_s28, [#allocation4], %s1724_s30, %s1724_s30, %s1725_s9  }
   0xe   :  { %s1726_s12 = smov [#allocation6]  }
   0xf   :  { %s43_s13 = sshll.u32 %s1726_s12, 4  ;;  %s44_s13 = int_to_ptr.vmem [resolvable:$true] %s43_s13 }
  0x10   :  { %s1685_s14 = scalar_lea.vmem %s44_s13, 1024  ;;  %p1690_p6 = scmp.lt.s32.totalorder %s44_s13, %s44_s13 }
  0x11   :  { %p1686_p5 = scmp.ne.s32.totalorder %s44_s13, %s1685_s14  ;;  %p1691_p7 = scmp.lt.s32.totalorder %s1685_s14, %s1685_s14 }
  0x13   :  { %p1692_p8 = por %p1691_p7, %p1690_p6 }
  0x15   :  { %p1693_p9 = pnand %p1692_p8, %p1686_p5 }
  0x17   :  { %1696 = shalt.err (!%p1693_p9)
}
  0x18   :  { %s1727_s15 = smov 128   ;;  %s1728_s16 = smov 8  }
  0x19   :  { %49 = dma.hbm_to_vmem [thread:$0]  %s2210_s6, 1024, %s44_s13, [#allocation7], %s1727_s15, %s1727_s15, %s1728_s16  }
  0x1a   :  { %1717 = dma.done.wait [#allocation4], 512  }
  0x1b   :  { %1718 = vsyncadd [#allocation4], 4294966784 }
  0x1c   :  { %1719 = dma.done.wait [#allocation7], 1024  }
  0x1d   :  { %1720 = vsyncadd [#allocation7], 4294966272  ;;  %vm131_vm0 = vcmask 1042432   ;;  %vm82_vm1 = vcmask 23552   ;;  %v74_v0 = vld [vmem:[%s2205_s1] sm:$0x7] }
  0x1e   :  { %v58_v1 = vld [vmem:[%s2204_s0] sm:$0xff]  ;;  %v59_v2 = vld [vmem:[%s2204_s0 + $0x8] sm:$0xff]  ;;  %1504 = vmatprep.subr.msk.mxu0 %vm131_vm0, %v74_v0  ;;  %v60_v3 = vld [vmem:[%s2204_s0 + $0x10] sm:$0xff]  ;;  %1549 = vmatprep.subr.msk.mxu1 %vm131_vm0, %v74_v0  ;;  %v1729_v37 = vmov 0.0   ;;  %vm320_vm2 = vcmask 130048   ;;  %vm495_vm3 = vcmask 523264  }
  0x1f   :  { %1506 = vmatprep.mubr.msk.f32.mxu0 %vm82_vm1, %v58_v1  ;;  %1505 = vmatpush3.msk.msra.mxu0 %vm131_vm0, %v74_v0  ;;  %v70_v4 = vld [vmem:[%s2204_s0 + $0x60] sm:$0xff]  ;;  %v71_v5 = vld [vmem:[%s2204_s0 + $0x68] sm:$0xff]  ;;  %v72_v6 = vld [vmem:[%s2204_s0 + $0x70] sm:$0xff]  ;;  %vm1731_vm4 = vmmov 0   ;;  %s1732_s12 = smov [#allocation8]  }
  0x20   :  { %1507 = vmatmul.mubr.msk.f32.vlgmr.msra.gmra.mxu0 %vm82_vm1, %v59_v2  ;;  %1550 = vmatpush3.msk.msra.mxu1 %vm131_vm0, %v74_v0  ;;  %v61_v7 = vld [vmem:[%s2204_s0 + $0x18] sm:$0xff]  ;;  %v62_v8 = vld [vmem:[%s2204_s0 + $0x20] sm:$0xff]  ;;  %v63_v10 = vld [vmem:[%s2204_s0 + $0x28] sm:$0xff]  ;;  %s1410_s13 = sshll.u32 %s1732_s12, 4  ;;  %s1411_s13 = int_to_ptr.vmem [resolvable:$true] %s1410_s13 }
  0x21   :  { %1509 = vmatprep.mubr.msk.f32.mxu0 %vm82_vm1, %v60_v3  ;;  %1524 = vmatprep.mubr.msk.f32.mxu1 %vm82_vm1, %v70_v4  ;;  %v73_v9 = vld [vmem:[%s2204_s0 + $0x78] sm:$0xff]  ;;  %v64_v11 = vld [vmem:[%s2204_s0 + $0x30] sm:$0xff]  ;;  %v66_v13 = vld [vmem:[%s2204_s0 + $0x40] sm:$0xff]  ;;  %s1697_s14 = scalar_lea.vmem %s1411_s13, 128  ;;  %p1702_p11 = scmp.lt.s32.totalorder %s1411_s13, %s1411_s13 }
  0x22   :  { %1525 = vmatmul.mubr.msk.f32.vlgmr.msra.gmra.mxu1 %vm82_vm1, %v71_v5  ;;  %v65_v12 = vld [vmem:[%s2204_s0 + $0x38] sm:$0xff]  ;;  %v67_v14 = vld [vmem:[%s2204_s0 + $0x48] sm:$0xff]  ;;  %v68_v15 = vld [vmem:[%s2204_s0 + $0x50] sm:$0xff]  ;;  %p1698_p10 = scmp.ne.s32.totalorder %s1411_s13, %s1697_s14  ;;  %p1703_p12 = scmp.lt.s32.totalorder %s1697_s14, %s1697_s14 }
  0x23   :  { %1527 = vmatprep.mubr.msk.f32.mxu1 %vm82_vm1, %v72_v6  ;;  %v69_v16 = vld [vmem:[%s2204_s0 + $0x58] sm:$0xff]  ;;  %v1859_v18 = vld [vmem:[%s2208_s4 + $0x70] sm:$0xff]  ;;  %v1866_v19 = vld [vmem:[%s2208_s4 + $0x68] sm:$0xff] }
  0x24   :  { %1510 = vmatmul.mubr.msk.f32.gmra.mxu0 %vm82_vm1, %v61_v7  ;;  %v1854_v17 = vld [vmem:[%s2208_s4 + $0x78] sm:$0xff]  ;;  %v1872_v20 = vld [vmem:[%s2208_s4 + $0x60] sm:$0xff]  ;;  %v1884_v22 = vld [vmem:[%s2208_s4 + $0x50] sm:$0xff]  ;;  %p1704_p13 = por %p1703_p12, %p1702_p11 }
  0x25   :  { %1512 = vmatprep.mubr.msk.f32.mxu0 %vm82_vm1, %v62_v8  ;;  %515 = vmatprep.subr.mxu0 %v1854_v17  ;;  %v1878_v21 = vld [vmem:[%s2208_s4 + $0x58] sm:$0xff]  ;;  %v1890_v23 = vld [vmem:[%s2208_s4 + $0x48] sm:$0xff]  ;;  %v1896_v24 = vld [vmem:[%s2208_s4 + $0x40] sm:$0xff] }
  0x26   :  { %1528 = vmatmul.mubr.msk.f32.gmra.mxu1 %vm82_vm1, %v73_v9  ;;  %516 = vmatpush1.msra.mxu0 %v1859_v18  ;;  %v1902_v25 = vld [vmem:[%s2208_s4 + $0x38] sm:$0xff]  ;;  %v1908_v26 = vld [vmem:[%s2208_s4 + $0x30] sm:$0xff]  ;;  %v1914_v27 = vld [vmem:[%s2208_s4 + $0x28] sm:$0xff]  ;;  %p1705_p0 = pnand %p1704_p13, %p1698_p10 }
  0x27   :  { %517 = vmatprep.subr.mxu0 %v1866_v19  ;;  %v1920_v28 = vld [vmem:[%s2208_s4 + $0x20] sm:$0xff]  ;;  %v307_v29 = vld [vmem:[#allocation3 + $0x18] sm:$0xff]  ;;  %v306_v31 = vld [vmem:[#allocation3 + $0x10] sm:$0xff]  ;;  %409 = vmatprep.mubr.f32.mxu1 %v1729_v37 }
  0x28   :  { %1513 = vmatmul.mubr.msk.f32.gmra.mxu0 %vm82_vm1, %v63_v10  ;;  %v1926_v30 = vld [vmem:[%s2208_s4 + $0x18] sm:$0xff]  ;;  %373 = vmatprep.subr.mxu1 %v307_v29  ;;  %v1932_v32 = vld [vmem:[%s2208_s4 + $0x10] sm:$0xff]  ;;  %v305_v33 = vld [vmem:[#allocation3 + $0x8] sm:$0xff] }
  0x29   :  { %1515 = vmatprep.mubr.msk.f32.mxu0 %vm82_vm1, %v64_v11  ;;  %518 = vmatpush1.msra.mxu0 %v1872_v20  ;;  %v1938_v34 = vld [vmem:[%s2208_s4 + $0x8] sm:$0xff]  ;;  %v304_v35 = vld [vmem:[#allocation3] sm:$0xff] }
  0x2a   :  { %519 = vmatprep.subr.mxu0 %v1878_v21  ;;  %374 = vmatpush1.msra.mxu1 %v306_v31  ;;  %v1944_v36 = vld [vmem:[%s2208_s4] sm:$0xff] }
  0x2b   :  { %520 = vmatpush1.msra.mxu0 %v1884_v22  ;;  %375 = vmatprep.subr.mxu1 %v305_v33  ;;  %v1974_v46 = vld [vmem:[%s2206_s2] ss:$0 sm:$0xff] }
  0x2c   :  { %1516 = vmatmul.mubr.msk.f32.gmra.mxu0 %vm82_vm1, %v65_v12  ;;  %521 = vmatprep.subr.mxu0 %v1890_v23 }
  0x2d   :  { %1518 = vmatprep.mubr.msk.f32.mxu0 %vm82_vm1, %v66_v13  ;;  %522 = vmatpush1.msra.mxu0 %v1896_v24 }
  0x2e   :  { %523 = vmatprep.subr.mxu0 %v1902_v25  ;;  %376 = vmatpush1.msra.mxu1 %v304_v35 }
  0x2f   :  { %524 = vmatpush1.msra.mxu0 %v1908_v26  ;;  %618 = vmatprep.subr.mxu1 %v1854_v17 }
  0x30   :  { %1519 = vmatmul.mubr.msk.f32.gmra.mxu0 %vm82_vm1, %v67_v14  ;;  %525 = vmatprep.subr.mxu0 %v1914_v27 }
  0x31   :  { %1521 = vmatprep.mubr.msk.f32.mxu0 %vm82_vm1, %v68_v15  ;;  %526 = vmatpush1.msra.mxu0 %v1920_v28 }
  0x32   :  { %527 = vmatprep.subr.mxu0 %v1926_v30 }
  0x33   :  { %528 = vmatpush1.msra.mxu0 %v1932_v32 }
  0x34   :  { %1522 = vmatmul.mubr.msk.f32.gmra.mxu0 %vm82_vm1, %v69_v16  ;;  %529 = vmatprep.subr.mxu0 %v1938_v34 }
  0x35   :  { %530 = vmatpush1.msra.mxu0 %v1944_v36  ;;  %563 = vmatprep.mubr.f32.mxu0 %v1729_v37 }
  0x36   :  { %721 = vmatprep.subr.mxu0 %v1854_v17 }
  0x38   :  { %564 = vmatmul.mubr.f32.vlgmr.msra.gmra.mxu0 %v1729_v37 }
  0x39   :  { %769 = vmatprep.mubr.f32.mxu0 %v1729_v37  ;;  %722 = vmatpush1.msra.mxu0 %v1859_v18 }
  0x3a   :  { %723 = vmatprep.subr.mxu0 %v1866_v19 }
  0x3b   :  { %724 = vmatpush1.msra.mxu0 %v1872_v20 }
  0x3c   :  { %725 = vmatprep.subr.mxu0 %v1878_v21 }
  0x3d   :  { %726 = vmatpush1.msra.mxu0 %v1884_v22 }
  0x3e   :  { %727 = vmatprep.subr.mxu0 %v1890_v23 }
  0x3f   :  { %728 = vmatpush1.msra.mxu0 %v1896_v24 }
  0x40   :  { %729 = vmatprep.subr.mxu0 %v1902_v25 }
  0x41   :  { %730 = vmatpush1.msra.mxu0 %v1908_v26 }
  0x42   :  { %731 = vmatprep.subr.mxu0 %v1914_v27 }
  0x43   :  { %732 = vmatpush1.msra.mxu0 %v1920_v28 }
  0x44   :  { %733 = vmatprep.subr.mxu0 %v1926_v30 }
  0x45   :  { %734 = vmatpush1.msra.mxu0 %v1932_v32 }
  0x46   :  { %735 = vmatprep.subr.mxu0 %v1938_v34 }
  0x47   :  { %736 = vmatpush1.msra.mxu0 %v1944_v36 }
  0x48   :  { %927 = vmatprep.subr.mxu0 %v1854_v17 }
  0xe0   :  { %v1508_v38 = vpop.f32.mrf.mxu0 }
  0xe1   :  { %v207_v53 = vadd.f32 %v1508_v38, %v1974_v46 }
  0xe2   :  { %v201_v39 = vpop.f32.mrf.mxu0  ;;  %v1526_v60 = vpop.f32.mrf.mxu1 }
  0xe3   :  { %v202_v48 = vadd.f32 %v1974_v46, %v201_v39  ;;  %v281_v61 = vmax.f32 %v207_v53, 0.0  ;;  %v267_v11 = vadd.f32 %v1526_v60, %v1974_v46 }
  0xe4   :  { %v1511_v40 = vpop.f32.mrf.mxu0  ;;  %v261_v2 = vpop.f32.mrf.mxu1 }
  0xe5   :  { %v280_v54 = vmax.f32 %v202_v48, 0.0  ;;  %v217_v3 = vadd.f32 %v1511_v40, %v1974_v46  ;;  %v262_v6 = vadd.f32 %v1974_v46, %v261_v2  ;;  %v293_v29 = vmax.f32 %v267_v11, 0.0 }
  0xe6   :  { %v211_v41 = vpop.f32.mrf.mxu0  ;;  %v1529_v9 = vpop.f32.mrf.mxu1 }
  0xe7   :  { %v212_v62 = vadd.f32 %v1974_v46, %v211_v41  ;;  %v283_v10 = vmax.f32 %v217_v3, 0.0  ;;  %v292_v14 = vmax.f32 %v262_v6, 0.0  ;;  %v277_v39 = vadd.f32 %v1529_v9, %v1974_v46 }
  0xe8   :  { %v1514_v42 = vpop.f32.mrf.mxu0  ;;  %v271_v16 = vpop.f32.mrf.mxu1 }
  0xe9   :  { %v282_v4 = vmax.f32 %v212_v62, 0.0  ;;  %v227_v12 = vadd.f32 %v1514_v42, %v1974_v46  ;;  %v272_v38 = vadd.f32 %v1974_v46, %v271_v16 }
  0xea   :  { %v221_v43 = vpop.f32.mrf.mxu0 }
  0xeb   :  { %v222_v5 = vadd.f32 %v1974_v46, %v221_v43  ;;  %v285_v31 = vmax.f32 %v227_v12, 0.0  ;;  %v294_v43 = vmax.f32 %v272_v38, 0.0 }
  0xec   :  { %v1969_v44 = vpop.f32.mrf.mxu0 }
  0xed   :  { %v284_v13 = vmax.f32 %v222_v5, 0.0  ;;  %v301_v40 = vmax.f32 %v285_v31, %v293_v29  ;;  %v237_v41 = vadd.f32 %v1969_v44, %v1974_v46 }
  0xee   :  { %v231_v45 = vpop.f32.mrf.mxu0 }
  0xef   :  { %v300_v33 = vmax.f32 %v284_v13, %v292_v14  ;;  %v232_v35 = vadd.f32 %v1974_v46, %v231_v45  ;;  %v287_v45 = vmax.f32 %v237_v41, 0.0 }
  0xf0   :  { %v1520_v47 = vpop.f32.mrf.mxu0 }
  0xf1   :  { %v247_v50 = vadd.f32 %v1520_v47, %v1974_v46  ;;  %v286_v42 = vmax.f32 %v232_v35, 0.0  ;;  %v295_v47 = vmax.f32 %v277_v39, 0.0 }
  0xf2   :  { %v241_v49 = vpop.f32.mrf.mxu0 }
  0xf3   :  { %v242_v51 = vadd.f32 %v1974_v46, %v241_v49  ;;  %v289_v57 = vmax.f32 %v247_v50, 0.0  ;;  %v302_v48 = vmax.f32 %v286_v42, %v294_v43  ;;  %v303_v49 = vmax.f32 %v287_v45, %v295_v47 }
  0xf4   :  { %v1523_v52 = vpop.f32.mrf.mxu0  ;;  %v310_v50 = vlaneseq }
  0xf5   :  { %v288_v55 = vmax.f32 %v242_v51, 0.0  ;;  %v297_v63 = vmax.f32 %v281_v61, %v289_v57  ;;  %v257_v0 = vadd.f32 %v1523_v52, %v1974_v46  ;;  %v308_v51 = vld [vmem:[%s2209_s5] sm:$0x3]  ;;  %s1730_s5 = smov 64  }
  0xf6   :  { %v251_v56 = vpop.f32.mrf.mxu0  ;;  %v311_v44 = vshrl.u32 %v310_v50, 7 }
  0xf7   :  { %v296_v58 = vmax.f32 %v280_v54, %v288_v55  ;;  %v252_v59 = vadd.f32 %v1974_v46, %v251_v56  ;;  %v291_v7 = vmax.f32 %v257_v0, 0.0 }
  0xf8   :  { %v312_v46 = vsub.s32 0, %v311_v44  ;;  %v565_v55 = vpop.f32.mrf.mxu0  ;;  %v316_v60 = vsub.s32 1, %v311_v44 }
  0xf9   :  { %1445 = vmatmul.mubr.msk.f32.vlgmr.msra.gmra.mxu1 %vm320_vm2, %v296_v58  ;;  %v290_v1 = vmax.f32 %v252_v59, 0.0  ;;  %v299_v15 = vmax.f32 %v283_v10, %v291_v7 }
  0xfa   :  { %415 = vmatprep.mubr.f32.mxu1 %v1729_v37  ;;  %619 = vmatpush1.msra.mxu1 %v1859_v18  ;;  %v2028_v52 = vrot.slane %v308_v51, %v312_v46  ;;  %v567_v9 = vpop.f32.mrf.mxu0 }
  0xfb   :  { %620 = vmatprep.subr.mxu1 %v1866_v19  ;;  %v298_v8 = vmax.f32 %v282_v4, %v290_v1 }
  0xfc   :  { %621 = vmatpush1.msra.mxu1 %v1872_v20 }
  0xfd   :  { %1446 = vmatmul.mubr.msk.f32.gmra.mxu1 %vm320_vm2, %v297_v63  ;;  %622 = vmatprep.subr.mxu1 %v1878_v21  ;;  %v2035_v63 = vrot.slane %v308_v51, %v316_v60 }
  0xfe   :  { %421 = vmatprep.mubr.f32.mxu1 %v1729_v37  ;;  %623 = vmatpush1.msra.mxu1 %v1884_v22 }
  0xff   :  { %624 = vmatprep.subr.mxu1 %v1890_v23 }
 0x100   :  { %625 = vmatpush1.msra.mxu1 %v1896_v24 }
 0x101   :  { %1447 = vmatmul.mubr.msk.f32.gmra.mxu1 %vm320_vm2, %v298_v8  ;;  %626 = vmatprep.subr.mxu1 %v1902_v25 }
 0x102   :  { %427 = vmatprep.mubr.f32.mxu1 %v1729_v37  ;;  %627 = vmatpush1.msra.mxu1 %v1908_v26 }
 0x103   :  { %628 = vmatprep.subr.mxu1 %v1914_v27 }
 0x104   :  { %629 = vmatpush1.msra.mxu1 %v1920_v28 }
 0x105   :  { %1448 = vmatmul.mubr.msk.f32.gmra.mxu1 %vm320_vm2, %v299_v15  ;;  %630 = vmatprep.subr.mxu1 %v1926_v30 }
 0x106   :  { %433 = vmatprep.mubr.f32.mxu1 %v1729_v37  ;;  %631 = vmatpush1.msra.mxu1 %v1932_v32 }
 0x107   :  { %632 = vmatprep.subr.mxu1 %v1938_v34 }
 0x108   :  { %633 = vmatpush1.msra.mxu1 %v1944_v36 }
 0x109   :  { %1449 = vmatmul.mubr.msk.f32.gmra.mxu1 %vm320_vm2, %v300_v33  ;;  %824 = vmatprep.subr.mxu1 %v1854_v17 }
 0x10a   :  { %439 = vmatprep.mubr.f32.mxu1 %v1729_v37 }
 0x10d   :  { %1450 = vmatmul.mubr.msk.f32.gmra.mxu1 %vm320_vm2, %v301_v40 }
 0x10e   :  { %445 = vmatprep.mubr.f32.mxu1 %v1729_v37 }
 0x111   :  { %1451 = vmatmul.mubr.msk.f32.gmra.mxu1 %vm320_vm2, %v302_v48 }
 0x112   :  { %451 = vmatprep.mubr.f32.mxu1 %v1729_v37 }
 0x115   :  { %1452 = vmatmul.mubr.msk.f32.gmra.mxu1 %vm320_vm2, %v303_v49 }
 0x116   :  { %666 = vmatprep.mubr.f32.mxu1 %v1729_v37 }
 0x1b9   :  { %v411_v53 = vpop.f32.mrf.mxu1 }
 0x1ba   :  { %v412_v54 = vadd.f32 %v411_v53, %v2028_v52 }
 0x1bb   :  { %v413_v56 = vpop.f32.mrf.mxu1 }
 0x1bc   :  { %v570_v57 = vadd.f32 %v565_v55, %v412_v54  ;;  %v414_v5 = vadd.f32 %v413_v56, %v2035_v63 }
 0x1bd   :  { %v2031_v58 = vpop.f32.mrf.mxu1 }
 0x1be   :  { %v1453_v59 = vmul.f32 -1.442695, %v570_v57  ;;  %v571_v11 = vadd.f32 %v567_v9, %v414_v5  ;;  %v418_v57 = vadd.f32 %v2031_v58, %v2028_v52 }
 0x1bf   :  { %v2033_v61 = vpop.f32.mrf.mxu1 }
 0x1c0   :  { %1561 = vpow2.f32 %v1453_v59  ;;  %v1454_v48 = vmul.f32 -1.442695, %v571_v11 }
 0x1c1   :  { %v423_v62 = vpop.f32.mrf.mxu1  ;;  %1563 = vtanh.f32 %v571_v11 }
 0x1c2   :  { %v2038_v0 = vadd.f32 %v423_v62, %v2028_v52 }
 0x1c3   :  { %v425_v1 = vpop.f32.mrf.mxu1 }
 0x1c4   :  { %v2041_v2 = vadd.f32 %v425_v1, %v2035_v63 }
 0x1c5   :  { %v429_v3 = vpop.f32.mrf.mxu1 }
 0x1c6   :  { %v2044_v4 = vadd.f32 %v429_v3, %v2028_v52  ;;  %v420_v3 = vadd.f32 %v2033_v61, %v2035_v63 }
 0x1c7   :  { %v431_v6 = vpop.f32.mrf.mxu1 }
 0x1c8   :  { %v2048_v7 = vadd.f32 %v431_v6, %v2035_v63 }
 0x1c9   :  { %v435_v8 = vpop.f32.mrf.mxu1 }
 0x1ca   :  { %v2051_v10 = vadd.f32 %v435_v8, %v2028_v52 }
 0x1cb   :  { %v437_v12 = vpop.f32.mrf.mxu1 }
 0x1cc   :  { %v2054_v13 = vadd.f32 %v437_v12, %v2035_v63 }
 0x1cd   :  { %v1562_v14 = vpop.eup %1561  ;;  %v441_v15 = vpop.f32.mrf.mxu1 }
 0x1ce   :  { %v578_v16 = vadd.f32 1.0, %v1562_v14  ;;  %v2057_v29 = vadd.f32 %v441_v15, %v2028_v52  ;;  %v1564_v43 = vpop.eup %1563 }
 0x1cf   :  { %v443_v31 = vpop.f32.mrf.mxu1 }
 0x1d0   :  { %1565 = vrcp.f32 %v578_v16  ;;  %v2060_v33 = vadd.f32 %v443_v31, %v2035_v63 }
 0x1d1   :  { %v447_v35 = vpop.f32.mrf.mxu1  ;;  %1567 = vpow2.f32 %v1454_v48 }
 0x1d2   :  { %v2063_v38 = vadd.f32 %v447_v35, %v2028_v52 }
 0x1d3   :  { %v449_v39 = vpop.f32.mrf.mxu1 }
 0x1d4   :  { %v2066_v40 = vadd.f32 %v449_v39, %v2035_v63 }
 0x1d5   :  { %v453_v41 = vpop.f32.mrf.mxu1 }
 0x1d6   :  { %v2069_v42 = vadd.f32 %v453_v41, %v2028_v52 }
 0x1d7   :  { %v2090_v56 = vpop.f32.mrf.mxu1 }
 0x1dd   :  { %v1566_v45 = vpop.eup %1565 }
 0x1de   :  { %v586_v47 = vmul.f32 %v1566_v45, %v1564_v43  ;;  %v1568_v49 = vpop.eup %1567  ;;  %v585_v44 = vmul.f32 0.0, %v1566_v45 }
 0x1df   :  { %v579_v50 = vadd.f32 1.0, %v1568_v49 }
 0x1e0   :  { %588 = vrot.lane.b32.xlu0 %v586_v47, %s1730_s5 }
 0x1e1   :  { %1569 = vrcp.f32 %v579_v50 }
 0x1ee   :  { %v1570_v53 = vpop.eup %1569 }
 0x252   :  { %v589_v46 = vpop.permute.xlu0 %588 }
 0x253   :  { %v591_v51 = vadd.f32 %v589_v46, %v585_v44 }
 0x255   :  { %1571 = vtanh.f32 %v591_v51 }
 0x262   :  { %v1572_v54 = vpop.eup %1571 }
 0x263   :  { %v593_v55 = vmul.f32 %v1572_v54, %v1570_v53 }
 0x265   :  { %1455 = vmatmul.mubr.msk.f32.vlgmr.msra.gmra.mxu1 %vm495_vm3, %v593_v55 }
 0x266   :  { %825 = vmatpush1.msra.mxu1 %v1859_v18  ;;  %872 = vmatprep.mubr.f32.mxu1 %v1729_v37 }
 0x267   :  { %826 = vmatprep.subr.mxu1 %v1866_v19 }
 0x268   :  { %827 = vmatpush1.msra.mxu1 %v1872_v20 }
 0x269   :  { %828 = vmatprep.subr.mxu1 %v1878_v21 }
 0x26a   :  { %829 = vmatpush1.msra.mxu1 %v1884_v22 }
 0x26b   :  { %830 = vmatprep.subr.mxu1 %v1890_v23 }
 0x26c   :  { %831 = vmatpush1.msra.mxu1 %v1896_v24 }
 0x26d   :  { %832 = vmatprep.subr.mxu1 %v1902_v25 }
 0x26e   :  { %833 = vmatpush1.msra.mxu1 %v1908_v26 }
 0x26f   :  { %834 = vmatprep.subr.mxu1 %v1914_v27 }
 0x270   :  { %835 = vmatpush1.msra.mxu1 %v1920_v28 }
 0x271   :  { %836 = vmatprep.subr.mxu1 %v1926_v30 }
 0x272   :  { %837 = vmatpush1.msra.mxu1 %v1932_v32 }
 0x273   :  { %838 = vmatprep.subr.mxu1 %v1938_v34 }
 0x274   :  { %839 = vmatpush1.msra.mxu1 %v1944_v36 }
 0x275   :  { %1030 = vmatprep.subr.mxu1 %v1854_v17 }
 0x325   :  { %v668_v59 = vpop.f32.mrf.mxu1 }
 0x326   :  { %v673_v60 = vadd.f32 %v668_v59, %v418_v57 }
 0x327   :  { %v670_v1 = vpop.f32.mrf.mxu1 }
 0x328   :  { %v1456_v62 = vmul.f32 -1.442695, %v673_v60  ;;  %v674_v5 = vadd.f32 %v670_v1, %v420_v3 }
 0x32a   :  { %1573 = vpow2.f32 %v1456_v62  ;;  %v1457_v14 = vmul.f32 -1.442695, %v674_v5 }
 0x32b   :  { %1575 = vtanh.f32 %v674_v5 }
 0x337   :  { %v1574_v6 = vpop.eup %1573 }
 0x338   :  { %v681_v8 = vadd.f32 1.0, %v1574_v6  ;;  %v1576_v9 = vpop.eup %1575 }
 0x33a   :  { %1577 = vrcp.f32 %v681_v8 }
 0x33b   :  { %1579 = vpow2.f32 %v1457_v14 }
 0x347   :  { %v1578_v11 = vpop.eup %1577 }
 0x348   :  { %v689_v12 = vmul.f32 %v1578_v11, %v1576_v9  ;;  %v1580_v52 = vpop.eup %1579  ;;  %v688_v15 = vmul.f32 %v1578_v11, %v591_v51 }
 0x349   :  { %v682_v58 = vadd.f32 1.0, %v1580_v52 }
 0x34a   :  { %691 = vrot.lane.b32.xlu0 %v689_v12, %s1730_s5 }
 0x34b   :  { %1581 = vrcp.f32 %v682_v58 }
 0x358   :  { %v1582_v61 = vpop.eup %1581 }
 0x3bc   :  { %v692_v16 = vpop.permute.xlu0 %691 }
 0x3bd   :  { %v694_v31 = vadd.f32 %v692_v16, %v688_v15 }
 0x3bf   :  { %1583 = vtanh.f32 %v694_v31 }
 0x3cc   :  { %v1584_v35 = vpop.eup %1583 }
 0x3cd   :  { %v696_v39 = vmul.f32 %v1584_v35, %v1582_v61 }
 0x3cf   :  { %1458 = vmatmul.mubr.msk.f32.vlgmr.msra.gmra.mxu0 %vm495_vm3, %v696_v39 }
 0x3d0   :  { %928 = vmatpush1.msra.mxu0 %v1859_v18  ;;  %975 = vmatprep.mubr.f32.mxu0 %v1729_v37 }
 0x3d1   :  { %929 = vmatprep.subr.mxu0 %v1866_v19 }
 0x3d2   :  { %930 = vmatpush1.msra.mxu0 %v1872_v20 }
 0x3d3   :  { %931 = vmatprep.subr.mxu0 %v1878_v21 }
 0x3d4   :  { %932 = vmatpush1.msra.mxu0 %v1884_v22 }
 0x3d5   :  { %933 = vmatprep.subr.mxu0 %v1890_v23 }
 0x3d6   :  { %934 = vmatpush1.msra.mxu0 %v1896_v24 }
 0x3d7   :  { %935 = vmatprep.subr.mxu0 %v1902_v25 }
 0x3d8   :  { %936 = vmatpush1.msra.mxu0 %v1908_v26 }
 0x3d9   :  { %937 = vmatprep.subr.mxu0 %v1914_v27 }
 0x3da   :  { %938 = vmatpush1.msra.mxu0 %v1920_v28 }
 0x3db   :  { %939 = vmatprep.subr.mxu0 %v1926_v30 }
 0x3dc   :  { %940 = vmatpush1.msra.mxu0 %v1932_v32 }
 0x3dd   :  { %941 = vmatprep.subr.mxu0 %v1938_v34 }
 0x3de   :  { %942 = vmatpush1.msra.mxu0 %v1944_v36 }
 0x3df   :  { %1133 = vmatprep.subr.mxu0 %v1854_v17 }
 0x48f   :  { %v771_v41 = vpop.f32.mrf.mxu0 }
 0x490   :  { %v776_v43 = vadd.f32 %v771_v41, %v2038_v0 }
 0x491   :  { %v773_v47 = vpop.f32.mrf.mxu0 }
 0x492   :  { %v1459_v45 = vmul.f32 -1.442695, %v776_v43  ;;  %v777_v48 = vadd.f32 %v773_v47, %v2041_v2 }
 0x494   :  { %1585 = vpow2.f32 %v1459_v45  ;;  %v1460_v53 = vmul.f32 -1.442695, %v777_v48 }
 0x495   :  { %1587 = vtanh.f32 %v777_v48 }
 0x4a1   :  { %v1586_v49 = vpop.eup %1585 }
 0x4a2   :  { %v784_v50 = vadd.f32 1.0, %v1586_v49  ;;  %v1588_v44 = vpop.eup %1587 }
 0x4a4   :  { %1589 = vrcp.f32 %v784_v50 }
 0x4a5   :  { %1591 = vpow2.f32 %v1460_v53 }
 0x4b1   :  { %v1590_v46 = vpop.eup %1589 }
 0x4b2   :  { %v792_v51 = vmul.f32 %v1590_v46, %v1588_v44  ;;  %v1592_v54 = vpop.eup %1591  ;;  %v791_v57 = vmul.f32 %v1590_v46, %v694_v31 }
 0x4b3   :  { %v785_v55 = vadd.f32 1.0, %v1592_v54 }
 0x4b4   :  { %794 = vrot.lane.b32.xlu1 %v792_v51, %s1730_s5 }
 0x4b5   :  { %1593 = vrcp.f32 %v785_v55 }
 0x4c2   :  { %v1594_v60 = vpop.eup %1593 }
 0x526   :  { %v795_v0 = vpop.permute.xlu1 %794 }
 0x527   :  { %v797_v59 = vadd.f32 %v795_v0, %v791_v57 }
 0x529   :  { %1595 = vtanh.f32 %v797_v59 }
 0x536   :  { %v1596_v2 = vpop.eup %1595 }
 0x537   :  { %v799_v62 = vmul.f32 %v1596_v2, %v1594_v60 }
 0x539   :  { %1461 = vmatmul.mubr.msk.f32.vlgmr.msra.gmra.mxu1 %vm495_vm3, %v799_v62 }
 0x53a   :  { %1031 = vmatpush1.msra.mxu1 %v1859_v18  ;;  %1078 = vmatprep.mubr.f32.mxu1 %v1729_v37 }
 0x53b   :  { %1032 = vmatprep.subr.mxu1 %v1866_v19 }
 0x53c   :  { %1033 = vmatpush1.msra.mxu1 %v1872_v20 }
 0x53d   :  { %1034 = vmatprep.subr.mxu1 %v1878_v21 }
 0x53e   :  { %1035 = vmatpush1.msra.mxu1 %v1884_v22 }
 0x53f   :  { %1036 = vmatprep.subr.mxu1 %v1890_v23 }
 0x540   :  { %1037 = vmatpush1.msra.mxu1 %v1896_v24 }
 0x541   :  { %1038 = vmatprep.subr.mxu1 %v1902_v25 }
 0x542   :  { %1039 = vmatpush1.msra.mxu1 %v1908_v26 }
 0x543   :  { %1040 = vmatprep.subr.mxu1 %v1914_v27 }
 0x544   :  { %1041 = vmatpush1.msra.mxu1 %v1920_v28 }
 0x545   :  { %1042 = vmatprep.subr.mxu1 %v1926_v30 }
 0x546   :  { %1043 = vmatpush1.msra.mxu1 %v1932_v32 }
 0x547   :  { %1044 = vmatprep.subr.mxu1 %v1938_v34 }
 0x548   :  { %1045 = vmatpush1.msra.mxu1 %v1944_v36 }
 0x549   :  { %1236 = vmatprep.subr.mxu1 %v1854_v17 }
 0x5f9   :  { %v874_v1 = vpop.f32.mrf.mxu1 }
 0x5fa   :  { %v879_v3 = vadd.f32 %v874_v1, %v2044_v4 }
 0x5fb   :  { %v876_v6 = vpop.f32.mrf.mxu1 }
 0x5fc   :  { %v1462_v5 = vmul.f32 -1.442695, %v879_v3  ;;  %v880_v8 = vadd.f32 %v876_v6, %v2048_v7 }
 0x5fe   :  { %1597 = vpow2.f32 %v1462_v5  ;;  %v1463_v58 = vmul.f32 -1.442695, %v880_v8 }
 0x5ff   :  { %1599 = vtanh.f32 %v880_v8 }
 0x60b   :  { %v1598_v9 = vpop.eup %1597 }
 0x60c   :  { %v887_v11 = vadd.f32 1.0, %v1598_v9  ;;  %v1600_v12 = vpop.eup %1599 }
 0x60e   :  { %1601 = vrcp.f32 %v887_v11 }
 0x60f   :  { %1603 = vpow2.f32 %v1463_v58 }
 0x61b   :  { %v1602_v14 = vpop.eup %1601 }
 0x61c   :  { %v895_v52 = vmul.f32 %v1602_v14, %v1600_v12  ;;  %v1604_v17 = vpop.eup %1603  ;;  %v894_v16 = vmul.f32 %v1602_v14, %v797_v59 }
 0x61d   :  { %v888_v15 = vadd.f32 1.0, %v1604_v17 }
 0x61e   :  { %897 = vrot.lane.b32.xlu1 %v895_v52, %s1730_s5 }
 0x61f   :  { %1605 = vrcp.f32 %v888_v15 }
 0x62c   :  { %v1606_v61 = vpop.eup %1605 }
 0x690   :  { %v898_v4 = vpop.permute.xlu1 %897 }
 0x691   :  { %v900_v31 = vadd.f32 %v898_v4, %v894_v16 }
 0x693   :  { %1607 = vtanh.f32 %v900_v31 }
 0x6a0   :  { %v1608_v7 = vpop.eup %1607 }
 0x6a1   :  { %v902_v35 = vmul.f32 %v1608_v7, %v1606_v61 }
 0x6a3   :  { %1464 = vmatmul.mubr.msk.f32.vlgmr.msra.gmra.mxu0 %vm495_vm3, %v902_v35 }
 0x6a4   :  { %1134 = vmatpush1.msra.mxu0 %v1859_v18  ;;  %1181 = vmatprep.mubr.f32.mxu0 %v1729_v37 }
 0x6a5   :  { %1135 = vmatprep.subr.mxu0 %v1866_v19 }
 0x6a6   :  { %1136 = vmatpush1.msra.mxu0 %v1872_v20 }
 0x6a7   :  { %1137 = vmatprep.subr.mxu0 %v1878_v21 }
 0x6a8   :  { %1138 = vmatpush1.msra.mxu0 %v1884_v22 }
 0x6a9   :  { %1139 = vmatprep.subr.mxu0 %v1890_v23 }
 0x6aa   :  { %1140 = vmatpush1.msra.mxu0 %v1896_v24 }
 0x6ab   :  { %1141 = vmatprep.subr.mxu0 %v1902_v25 }
 0x6ac   :  { %1142 = vmatpush1.msra.mxu0 %v1908_v26 }
 0x6ad   :  { %1143 = vmatprep.subr.mxu0 %v1914_v27 }
 0x6ae   :  { %1144 = vmatpush1.msra.mxu0 %v1920_v28 }
 0x6af   :  { %1145 = vmatprep.subr.mxu0 %v1926_v30 }
 0x6b0   :  { %1146 = vmatpush1.msra.mxu0 %v1932_v32 }
 0x6b1   :  { %1147 = vmatprep.subr.mxu0 %v1938_v34 }
 0x6b2   :  { %1148 = vmatpush1.msra.mxu0 %v1944_v36 }
 0x6b3   :  { %1530 = vmatprep.subr.mxu0 %v1729_v37 }
 0x763   :  { %v977_v39 = vpop.f32.mrf.mxu0 }
 0x764   :  { %v982_v41 = vadd.f32 %v977_v39, %v2051_v10 }
 0x765   :  { %v979_v45 = vpop.f32.mrf.mxu0 }
 0x766   :  { %v1465_v43 = vmul.f32 -1.442695, %v982_v41  ;;  %v983_v47 = vadd.f32 %v979_v45, %v2054_v13  ;;  %v456_v41 = vadd.f32 %v2090_v56, %v2035_v63  ;;  %v1318_v63 = vld [vmem:[#allocation6 + $0x18] sm:$0xff] }
 0x768   :  { %1609 = vpow2.f32 %v1465_v43  ;;  %v1466_v51 = vmul.f32 -1.442695, %v983_v47 }
 0x769   :  { %1611 = vtanh.f32 %v983_v47 }
 0x775   :  { %v1610_v48 = vpop.eup %1609 }
 0x776   :  { %v990_v49 = vadd.f32 1.0, %v1610_v48  ;;  %v1612_v50 = vpop.eup %1611  ;;  %v1322_v48 = vld [vmem:[#allocation6 + $0x38] sm:$0xff] }
 0x778   :  { %1613 = vrcp.f32 %v990_v49  ;;  %v1321_v49 = vld [vmem:[#allocation6 + $0x30] sm:$0xff] }
 0x779   :  { %1615 = vpow2.f32 %v1466_v51 }
 0x785   :  { %v1614_v44 = vpop.eup %1613 }
 0x786   :  { %v998_v46 = vmul.f32 %v1614_v44, %v1612_v50  ;;  %v1616_v53 = vpop.eup %1615  ;;  %v997_v55 = vmul.f32 %v1614_v44, %v900_v31  ;;  %v1319_v50 = vld [vmem:[#allocation6 + $0x20] sm:$0xff] }
 0x787   :  { %v991_v54 = vadd.f32 1.0, %v1616_v53  ;;  %v1316_v53 = vld [vmem:[#allocation6 + $0x8] sm:$0xff] }
 0x788   :  { %1000 = vrot.lane.b32.xlu0 %v998_v46, %s1730_s5  ;;  %v1317_v46 = vld [vmem:[#allocation6 + $0x10] sm:$0xff] }
 0x789   :  { %1617 = vrcp.f32 %v991_v54  ;;  %v1315_v54 = vld [vmem:[#allocation6] sm:$0xff] }
 0x796   :  { %v1618_v0 = vpop.eup %1617 }
 0x7fa   :  { %v1001_v10 = vpop.permute.xlu0 %1000 }
 0x7fb   :  { %v1003_v57 = vadd.f32 %v1001_v10, %v997_v55 }
 0x7fd   :  { %1619 = vtanh.f32 %v1003_v57 }
 0x80a   :  { %v1620_v13 = vpop.eup %1619 }
 0x80b   :  { %v1005_v59 = vmul.f32 %v1620_v13, %v1618_v0 }
 0x80d   :  { %1467 = vmatmul.mubr.msk.f32.vlgmr.msra.gmra.mxu1 %vm495_vm3, %v1005_v59 }
 0x80e   :  { %1237 = vmatpush1.msra.mxu1 %v1859_v18  ;;  %1284 = vmatprep.mubr.f32.mxu1 %v1729_v37 }
 0x80f   :  { %1238 = vmatprep.subr.mxu1 %v1866_v19 }
 0x810   :  { %1239 = vmatpush1.msra.mxu1 %v1872_v20 }
 0x811   :  { %1240 = vmatprep.subr.mxu1 %v1878_v21 }
 0x812   :  { %1241 = vmatpush1.msra.mxu1 %v1884_v22 }
 0x813   :  { %1242 = vmatprep.subr.mxu1 %v1890_v23 }
 0x814   :  { %1243 = vmatpush1.msra.mxu1 %v1896_v24 }
 0x815   :  { %1244 = vmatprep.subr.mxu1 %v1902_v25 }
 0x816   :  { %1245 = vmatpush1.msra.mxu1 %v1908_v26 }
 0x817   :  { %1246 = vmatprep.subr.mxu1 %v1914_v27 }
 0x818   :  { %1247 = vmatpush1.msra.mxu1 %v1920_v28 }
 0x819   :  { %1248 = vmatprep.subr.mxu1 %v1926_v30 }
 0x81a   :  { %1249 = vmatpush1.msra.mxu1 %v1932_v32 }
 0x81b   :  { %1250 = vmatprep.subr.mxu1 %v1938_v34 }
 0x81c   :  { %1251 = vmatpush1.msra.mxu1 %v1944_v36 }
 0x8cd   :  { %v1080_v18 = vpop.f32.mrf.mxu1 }
 0x8ce   :  { %v1085_v19 = vadd.f32 %v1080_v18, %v2057_v29 }
 0x8cf   :  { %v1082_v21 = vpop.f32.mrf.mxu1 }
 0x8d0   :  { %v1468_v20 = vmul.f32 -1.442695, %v1085_v19  ;;  %v1086_v22 = vadd.f32 %v1082_v21, %v2060_v33  ;;  %v1476_v21 = vld [vmem:[%s2211_s7] ss:$0 sm:$0xff] }
 0x8d2   :  { %1621 = vpow2.f32 %v1468_v20  ;;  %v1469_v28 = vmul.f32 -1.442695, %v1086_v22 }
 0x8d3   :  { %1623 = vtanh.f32 %v1086_v22 }
 0x8df   :  { %v1622_v23 = vpop.eup %1621 }
 0x8e0   :  { %v1093_v24 = vadd.f32 1.0, %v1622_v23  ;;  %v1624_v25 = vpop.eup %1623 }
 0x8e2   :  { %1625 = vrcp.f32 %v1093_v24 }
 0x8e3   :  { %1627 = vpow2.f32 %v1469_v28 }
 0x8ef   :  { %v1626_v26 = vpop.eup %1625 }
 0x8f0   :  { %v1101_v27 = vmul.f32 %v1626_v26, %v1624_v25  ;;  %v1628_v30 = vpop.eup %1627  ;;  %v1100_v34 = vmul.f32 %v1626_v26, %v1003_v57 }
 0x8f1   :  { %v1094_v32 = vadd.f32 1.0, %v1628_v30 }
 0x8f2   :  { %1103 = vrot.lane.b32.xlu1 %v1101_v27, %s1730_s5 }
 0x8f3   :  { %1629 = vrcp.f32 %v1094_v32 }
 0x900   :  { %v1630_v60 = vpop.eup %1629 }
 0x964   :  { %v1104_v36 = vpop.permute.xlu1 %1103 }
 0x965   :  { %v1106_v29 = vadd.f32 %v1104_v36, %v1100_v34 }
 0x967   :  { %1631 = vtanh.f32 %v1106_v29 }
 0x974   :  { %v1632_v33 = vpop.eup %1631 }
 0x975   :  { %v1108_v2 = vmul.f32 %v1632_v33, %v1630_v60 }
 0x977   :  { %1470 = vmatmul.mubr.msk.f32.vlgmr.msra.gmra.mxu0 %vm495_vm3, %v1108_v2 }
 0x978   :  { %1531 = vmatpush3.msra.mxu0 %v1322_v48  ;;  %1546 = vmatprep.mubr.msk.f32.mxu0 %vm1731_vm4, %v1729_v37 }
 0x979   :  { %1532 = vmatprep.subr.mxu0 %v1729_v37 }
 0x97a   :  { %1533 = vmatpush3.msra.mxu0 %v1321_v49 }
 0x97b   :  { %1534 = vmatprep.subr.mxu0 %v1729_v37 }
 0xa37   :  { %v1183_v62 = vpop.f32.mrf.mxu0 }
 0xa38   :  { %v1188_v1 = vadd.f32 %v1183_v62, %v2063_v38 }
 0xa39   :  { %v1185_v5 = vpop.f32.mrf.mxu0 }
 0xa3a   :  { %v1471_v3 = vmul.f32 -1.442695, %v1188_v1  ;;  %v1189_v6 = vadd.f32 %v1185_v5, %v2066_v40 }
 0xa3c   :  { %1633 = vpow2.f32 %v1471_v3  ;;  %v1472_v52 = vmul.f32 -1.442695, %v1189_v6 }
 0xa3d   :  { %1635 = vtanh.f32 %v1189_v6 }
 0xa49   :  { %v1634_v8 = vpop.eup %1633 }
 0xa4a   :  { %v1196_v9 = vadd.f32 1.0, %v1634_v8  ;;  %v1636_v11 = vpop.eup %1635 }
 0xa4c   :  { %1637 = vrcp.f32 %v1196_v9 }
 0xa4d   :  { %1639 = vpow2.f32 %v1472_v52 }
 0xa59   :  { %v1638_v12 = vpop.eup %1637 }
 0xa5a   :  { %v1204_v14 = vmul.f32 %v1638_v12, %v1636_v11  ;;  %v1640_v58 = vpop.eup %1639  ;;  %v1203_v15 = vmul.f32 %v1638_v12, %v1106_v29 }
 0xa5b   :  { %v1197_v17 = vadd.f32 1.0, %v1640_v58 }
 0xa5c   :  { %1206 = vrot.lane.b32.xlu0 %v1204_v14, %s1730_s5 }
 0xa5d   :  { %1641 = vrcp.f32 %v1197_v17 }
 0xa6a   :  { %v1642_v4 = vpop.eup %1641 }
 0xace   :  { %v1207_v38 = vpop.permute.xlu0 %1206 }
 0xacf   :  { %v1209_v16 = vadd.f32 %v1207_v38, %v1203_v15 }
 0xad1   :  { %1643 = vtanh.f32 %v1209_v16 }
 0xade   :  { %v1644_v40 = vpop.eup %1643 }
 0xadf   :  { %v1211_v31 = vmul.f32 %v1644_v40, %v1642_v4 }
 0xae1   :  { %1473 = vmatmul.mubr.msk.f32.vlgmr.msra.gmra.mxu1 %vm495_vm3, %v1211_v31 }
 0xba1   :  { %v1286_v61 = vpop.f32.mrf.mxu1 }
 0xba2   :  { %v1291_v7 = vadd.f32 %v1286_v61, %v2069_v42  ;;  %v1320_v42 = vld [vmem:[#allocation6 + $0x28] sm:$0xff] }
 0xba3   :  { %v1288_v39 = vpop.f32.mrf.mxu1  ;;  %1535 = vmatpush3.msra.mxu0 %v1320_v42 }
 0xba4   :  { %v1474_v35 = vmul.f32 -1.442695, %v1291_v7  ;;  %v1292_v43 = vadd.f32 %v1288_v39, %v456_v41  ;;  %1536 = vmatprep.subr.mxu0 %v1729_v37 }
 0xba5   :  { %1537 = vmatpush3.msra.mxu0 %v1319_v50 }
 0xba6   :  { %1645 = vpow2.f32 %v1474_v35  ;;  %1538 = vmatprep.subr.mxu0 %v1729_v37  ;;  %v1475_v55 = vmul.f32 -1.442695, %v1292_v43 }
 0xba7   :  { %1647 = vtanh.f32 %v1292_v43  ;;  %1539 = vmatpush3.msra.mxu0 %v1318_v63 }
 0xba8   :  { %1540 = vmatprep.subr.mxu0 %v1729_v37 }
 0xba9   :  { %1541 = vmatpush3.msra.mxu0 %v1317_v46 }
 0xbaa   :  { %1542 = vmatprep.subr.mxu0 %v1729_v37 }
 0xbab   :  { %1543 = vmatpush3.msra.mxu0 %v1316_v53 }
 0xbac   :  { %1544 = vmatprep.subr.mxu0 %v1729_v37 }
 0xbad   :  { %1545 = vmatpush3.msra.mxu0 %v1315_v54 }
 0xbb3   :  { %v1646_v45 = vpop.eup %1645 }
 0xbb4   :  { %v1299_v47 = vadd.f32 1.0, %v1646_v45  ;;  %v1648_v56 = vpop.eup %1647 }
 0xbb6   :  { %1649 = vrcp.f32 %v1299_v47 }
 0xbb7   :  { %1651 = vpow2.f32 %v1475_v55 }
 0xbc3   :  { %v1650_v44 = vpop.eup %1649 }
 0xbc4   :  { %v1307_v51 = vmul.f32 %v1650_v44, %v1648_v56  ;;  %v1652_v10 = vpop.eup %1651  ;;  %v1306_v0 = vmul.f32 %v1650_v44, %v1209_v16 }
 0xbc5   :  { %v1300_v57 = vadd.f32 1.0, %v1652_v10 }
 0xbc6   :  { %1309 = vrot.lane.b32.xlu1 %v1307_v51, %s1730_s5 }
 0xbc7   :  { %1653 = vrcp.f32 %v1300_v57 }
 0xbd4   :  { %v1654_v18 = vpop.eup %1653 }
 0xc38   :  { %v1310_v13 = vpop.permute.xlu1 %1309 }
 0xc39   :  { %v1312_v59 = vadd.f32 %v1310_v13, %v1306_v0 }
 0xc3b   :  { %1655 = vtanh.f32 %v1312_v59 }
 0xc48   :  { %v1656_v19 = vpop.eup %1655 }
 0xc49   :  { %v1314_v20 = vmul.f32 %v1656_v19, %v1654_v18 }
 0xc4b   :  { %1547 = vmatmul.mubr.msk.f32.vlgmr.msra.gmra.mxu0 %vm495_vm3, %v1314_v20 }
 0xd0b   :  { %v1399_v37 = vpop.f32.mrf.mxu0 }
 0xd0c   :  { %v1400_v22 = vadd.f32 %v1476_v21, %v1399_v37 }
 0xd0d   :  { %v1548_v23 = vpop.f32.mrf.mxu0 }
 0xd0e   :  { %1403 = vst [vmem:[#allocation8] sm:$0xff] %v1400_v22 }
 0xd0f   :  { %1708 = shalt.err (!%p1705_p0)
}
 0xd10   :  { %1413 = dma.vmem_to_hbm [thread:$0]  %s1411_s13, 128, %s2212_s8, [#allocation5]  }
 0xd11   :  { %1721 = dma.done.wait [#allocation5], 128  }
 0xd12   :  { %1722 = vsyncadd [#allocation5], 4294967168 }
 0xd13   :  { %1417 = vsyncpa [#allocation4], 1 }
 0xd14   :  { %1418 = vsyncpa [#allocation7], 1 }
 0xd15   :  { %1419 = vsyncpa [#allocation5], 1 }

</bundles_post_ra>
